<compile_context>
chip_gen: v7x
topology: tpu7x:2x2x1
jax: 0.10.0
libtpu: 0.0.40
codegen_flags: <defaults>
</compile_context>

<pallas_src>
import jax
import jax.numpy as jnp
from jax.experimental import pallas as pl
from jax.experimental.pallas import tpu as pltpu


# ----------------------------------------------------------------------------
# Tiling helpers
# ----------------------------------------------------------------------------
def _cdiv(a, b):
    return -(-a // b)


def _round_up(x, m):
    return _cdiv(x, m) * m


def _choose_tiling(bs, tb_max, *, min_steps=2):
    """Pick (bs_pad, tile, grid_steps).

    - batch padded to a multiple of 128 (lane-dense output stores),
    - tile a multiple of 128,
    - >= min_steps grid steps whenever the batch allows it (so a 2-TC chip
      shards the "parallel" grid axis across both TensorCores),
    - residual padding capped at <= ~128 lanes per step instead of rounding
      the batch up to a whole tile.
    """
    bs_pad = _round_up(max(bs, 1), 128)
    tb_max = max(128, tb_max // 128 * 128)
    steps = _cdiv(bs_pad, tb_max)
    if bs_pad >= min_steps * 128:
        steps = max(steps, min_steps)
    tb = _round_up(_cdiv(bs_pad, steps), 128)
    steps = _cdiv(bs_pad, tb)
    return steps * tb, tb, steps


# ----------------------------------------------------------------------------
# Kernels
# ----------------------------------------------------------------------------
def _make_fused_kernel(n_emb):
    """Tables resident in VMEM; gather via weighted one-hot matmul on the MXU."""

    def kernel(wt_ref, wc_ref, idx_ref, tab_ref, out_ref):
        # wt/wc : (n_emb,)          f32  SMEM  softmax-normalized type weights
        # idx   : (2, n_emb, TB)    i32  VMEM  [target|context] indices (lane-dense batch)
        # tab   : (2*n_emb, d, Vp)  f32  VMEM  transposed, zero-padded tables (resident)
        # out   : (1, TB)           f32  VMEM
        d = tab_ref.shape[1]
        vp = tab_ref.shape[2]
        tb = idx_ref.shape[-1]

        idx = idx_ref[...]                                         # (2, n_emb, TB)
        row = jax.lax.broadcasted_iota(jnp.int32, (vp, tb), 0)     # vocab rows on sublanes

        t = jnp.zeros((d, tb), jnp.float32)
        c = jnp.zeros((d, tb), jnp.float32)
        for i in range(n_emb):                                     # n_emb small & static
            # Weighted one-hot selectors: sel[v, b] = w_i if v == idx_i[b] else 0.
            sel_t = jnp.where(row == idx[0, i][None, :], wt_ref[i], 0.0)
            sel_c = jnp.where(row == idx[1, i][None, :], wc_ref[i], 0.0)
            # (d, Vp) @ (Vp, TB) -> (d, TB): gather + weight + sum in one MXU dot.
            t = t + jnp.dot(tab_ref[i], sel_t,
                            preferred_element_type=jnp.float32)
            c = c + jnp.dot(tab_ref[n_emb + i], sel_c,
                            preferred_element_type=jnp.float32)

        # Per-batch-element inner product over d (sublane reduce), then sigmoid.
        logits = jnp.sum(t * c, axis=0, keepdims=True)             # (1, TB)
        out_ref[...] = jax.nn.sigmoid(logits)

    return kernel


def _make_unfused_kernel(n_emb):
    """Activations gathered in XLA and streamed (optionally bf16) through HBM."""

    def kernel(wt_ref, wc_ref, act_ref, out_ref):
        # act : (2, n_emb, d, TB)  bf16/f32  VMEM  (batch on the lane axis)
        t = wt_ref[0] * act_ref[0, 0].astype(jnp.float32)
        c = wc_ref[0] * act_ref[1, 0].astype(jnp.float32)
        for i in range(1, n_emb):
            t = t + wt_ref[i] * act_ref[0, i].astype(jnp.float32)
            c = c + wc_ref[i] * act_ref[1, i].astype(jnp.float32)
        logits = jnp.sum(t * c, axis=0, keepdims=True)             # (1, TB)
        out_ref[...] = jax.nn.sigmoid(logits)

    return kernel


# ----------------------------------------------------------------------------
# Wrapper
# ----------------------------------------------------------------------------
def multi_embedding_sgns_forward(x, params, *, tb_max=8192, use_fused=None,
                                 activation_dtype=jnp.bfloat16):
    """Forward pass of MultiEmbeddingSGNS.

    x: (bs, 2, n_emb) integer indices; x[:, 0, :] target, x[:, 1, :] context.
    Returns sigmoid(<weighted target emb, weighted context emb>) of shape (bs,)
    (a 0-d scalar for bs == 1), matching the PyTorch module's `.squeeze()`.
    """
    bs, _, n_emb = x.shape
    tgt_tables = params["target_tables"]
    ctx_tables = params["context_tables"]
    d = tgt_tables[0].shape[1]
    vocab_sizes = [int(t.shape[0]) for t in tgt_tables]
    vp = _round_up(max(vocab_sizes), 128)
    table_bytes = 2 * n_emb * d * vp * 4

    # Softmax over embedding-type weights hoisted out of the kernel (tiny).
    wt = jax.nn.softmax(params["target_weights"][:, 0], axis=0).astype(jnp.float32)
    wc = jax.nn.softmax(params["context_weights"][:, 0], axis=0).astype(jnp.float32)

    if use_fused is None:
        use_fused = (vp <= 1024) and (table_bytes <= 8 * 1024 * 1024)

    if use_fused:
        # Cap the tile so tables + one-hot selectors + accumulators fit VMEM.
        per_lane_bytes = 4 * (2 * d + 3 * vp) + 16 * n_emb
        tb_cap = max(
            128,
            min(tb_max,
                (24 * 1024 * 1024 - table_bytes) // per_lane_bytes // 128 * 128),
        )
        bs_pad, tb, steps = _choose_tiling(bs, tb_cap)

        # Pad the tiny index arrays (not activations), batch on the lane axis.
        idx = jnp.transpose(x.astype(jnp.int32), (1, 2, 0))        # (2, n_emb, bs)
        if bs_pad != bs:
            idx = jnp.pad(idx, ((0, 0), (0, 0), (0, bs_pad - bs)))

        # Tables: transpose to (d, V) and zero-pad vocab to Vp; stacked so one
        # BlockSpec keeps all of them VMEM-resident across the grid.
        def prep(tbl):
            return jnp.pad(tbl.astype(jnp.float32).T,
                           ((0, 0), (0, vp - tbl.shape[0])))
        tables = jnp.stack([prep(t) for t in tgt_tables]
                           + [prep(t) for t in ctx_tables], axis=0)  # (2*n_emb, d, Vp)

        cost = pl.CostEstimate(
            flops=4 * n_emb * d * vp * bs_pad + 3 * d * bs_pad,
            transcendentals=bs_pad,
            bytes_accessed=int(idx.size) * 4 + int(tables.size) * 4 + bs_pad * 4,
        )
        out = pl.pallas_call(
            _make_fused_kernel(n_emb),
            out_shape=jax.ShapeDtypeStruct((1, bs_pad), jnp.float32),
            grid=(steps,),
            in_specs=[
                pl.BlockSpec(memory_space=pltpu.MemorySpace.SMEM),       # wt
                pl.BlockSpec(memory_space=pltpu.MemorySpace.SMEM),       # wc
                pl.BlockSpec((2, n_emb, tb), lambda i: (0, 0, i)),       # indices
                pl.BlockSpec((2 * n_emb, d, vp), lambda i: (0, 0, 0)),   # tables (resident)
            ],
            out_specs=pl.BlockSpec((1, tb), lambda i: (0, i)),
            compiler_params=pltpu.CompilerParams(
                dimension_semantics=("parallel",),
                vmem_limit_bytes=32 * 1024 * 1024,
            ),
            cost_estimate=cost,
        )(wt, wc, idx, tables)
    else:
        bs_pad, tb, steps = _choose_tiling(bs, tb_max)

        # Pad the tiny index arrays BEFORE the gather so the gathered
        # activations are emitted directly at the padded size.
        xi = x.astype(jnp.int32)
        if bs_pad != bs:
            xi = jnp.pad(xi, ((0, bs_pad - bs), (0, 0), (0, 0)))
        tgt_idx = xi[:, 0, :]
        ctx_idx = xi[:, 1, :]

        # Glue: XLA gathers, transposed to put batch on the lane axis, target
        # and context concatenated into a single stream, stored as bf16.
        act = jnp.stack(
            [jnp.stack([tbl[tgt_idx[:, i]].T for i, tbl in enumerate(tgt_tables)], 0),
             jnp.stack([tbl[ctx_idx[:, i]].T for i, tbl in enumerate(ctx_tables)], 0)],
            axis=0,
        ).astype(activation_dtype)                    # (2, n_emb, d, bs_pad)

        cost = pl.CostEstimate(
            flops=(4 * n_emb + 3) * d * bs_pad,
            transcendentals=bs_pad,
            bytes_accessed=int(act.size) * act.dtype.itemsize + bs_pad * 4,
        )
        out = pl.pallas_call(
            _make_unfused_kernel(n_emb),
            out_shape=jax.ShapeDtypeStruct((1, bs_pad), jnp.float32),
            grid=(steps,),
            in_specs=[
                pl.BlockSpec(memory_space=pltpu.MemorySpace.SMEM),        # wt
                pl.BlockSpec(memory_space=pltpu.MemorySpace.SMEM),        # wc
                pl.BlockSpec((2, n_emb, d, tb), lambda i: (0, 0, 0, i)),  # activations
            ],
            out_specs=pl.BlockSpec((1, tb), lambda i: (0, i)),
            compiler_params=pltpu.CompilerParams(
                dimension_semantics=("parallel",),
                vmem_limit_bytes=32 * 1024 * 1024,
            ),
            cost_estimate=cost,
        )(wt, wc, act)

    return jnp.squeeze(out[0, :bs])


# ----------------------------------------------------------------------------
# Pure-JAX reference + parameter init (match the PyTorch module)
# ----------------------------------------------------------------------------
def reference_forward(x, params):
    tgt_idx = x[:, 0, :]
    ctx_idx = x[:, 1, :]
    tgt_emb = jnp.stack(
        [tbl[tgt_idx[:, i]] for i, tbl in enumerate(params["target_tables"])], axis=1
    )   # (bs, n_emb, d)
    ctx_emb = jnp.stack(
        [tbl[ctx_idx[:, i]] for i, tbl in enumerate(params["context_tables"])], axis=1
    )
    wt = jax.nn.softmax(params["target_weights"], axis=0)
    wc = jax.nn.softmax(params["context_weights"], axis=0)
    hi = jax.lax.Precision.HIGHEST
    t = jnp.einsum("bnd,nl->bld", tgt_emb, wt, precision=hi)   # (bs, 1, d)
    c = jnp.einsum("bnd,nl->bld", ctx_emb, wc, precision=hi)   # (bs, 1, d)
    logits = jnp.einsum("bld,bmd->blm", t, c, precision=hi)    # (bs, 1, 1)
    return jnp.squeeze(jax.nn.sigmoid(logits))


def init_params(key, vocab_size, embedding_dim, side_info_specs):
    sizes = [vocab_size] + list(side_info_specs.values())
    n_emb = len(sizes)
    keys = jax.random.split(key, 2 * n_emb + 2)
    # nn.Embedding default init: N(0, 1)
    target_tables = [
        jax.random.normal(keys[i], (s, embedding_dim), jnp.float32)
        for i, s in enumerate(sizes)
    ]
    context_tables = [
        jax.random.normal(keys[n_emb + i], (s, embedding_dim), jnp.float32)
        for i, s in enumerate(sizes)
    ]
    # xavier_normal on (n_emb, 1): std = sqrt(2 / (n_emb + 1))
    xavier_std = (2.0 / (n_emb + 1)) ** 0.5
    target_weights = xavier_std * jax.random.normal(keys[-2], (n_emb, 1), jnp.float32)
    context_weights = xavier_std * jax.random.normal(keys[-1], (n_emb, 1), jnp.float32)
    return {
        "target_tables": target_tables,
        "context_tables": context_tables,
        "target_weights": target_weights,
        "context_weights": context_weights,
    }


# ----------------------------------------------------------------------------
# Self-test
# ----------------------------------------------------------------------------
if __name__ == "__main__":
    vocab_size = 50
    embedding_dim = 32
    side_info_specs = {"pos": 10, "cluster": 7}
    n_emb = 1 + len(side_info_specs)

    key = jax.random.PRNGKey(0)
    k_params, k_idx, k_idx2 = jax.random.split(key, 3)
    params = init_params(k_params, vocab_size, embedding_dim, side_info_specs)
    sizes = jnp.array([vocab_size] + list(side_info_specs.values()), jnp.int32)

    # --- Check 1: fused path (VMEM-resident tables, in-kernel gather), small batch.
    bs = 8
    raw = jax.random.randint(k_idx, (bs, 2, n_emb), 0, 10_000, dtype=jnp.int32)
    x = raw % sizes[None, None, :]
    out = jax.block_until_ready(multi_embedding_sgns_forward(x, params))
    ref = reference_forward(x, params)
    assert out.shape == (bs,)
    # Tolerance leaves margin for MXU matmul pass precision in the one-hot gather.
    assert jnp.allclose(out, ref, atol=2e-2, rtol=2e-2)

    # --- Check 2: fused path, batch not a multiple of 128, multi-step grid.
    bs2 = 300
    raw2 = jax.random.randint(k_idx2, (bs2, 2, n_emb), 0, 10_000, dtype=jnp.int32)
    x2 = raw2 % sizes[None, None, :]
    out2 = jax.block_until_ready(multi_embedding_sgns_forward(x2, params, tb_max=128))
    ref2 = reference_forward(x2, params)
    assert out2.shape == (bs2,)
    assert jnp.allclose(out2, ref2, atol=2e-2, rtol=2e-2)

    # --- Check 3: fallback path (XLA gather + streamed activations), f32, exact-ish.
    out3 = jax.block_until_ready(
        multi_embedding_sgns_forward(x2, params, use_fused=False,
                                     activation_dtype=jnp.float32))
    assert out3.shape == (bs2,)
    assert jnp.allclose(out3, ref2, atol=1e-4, rtol=1e-4)

    # --- Check 4: fallback path with bf16 activation streaming (looser tolerance).
    out4 = jax.block_until_ready(
        multi_embedding_sgns_forward(x2, params, use_fused=False))
    assert out4.shape == (bs2,)
    assert jnp.allclose(out4, ref2, atol=5e-2, rtol=5e-2)

    print("KERNEL_OK")
</pallas_src>

<mosaic_0001>
module attributes {stable_mosaic.version = 11 : i64} {
  func.func @kernel(%arg0: i32, %arg1: memref<3xf32, #tpu.memory_space<smem>>, %arg2: memref<3xf32, #tpu.memory_space<smem>>, %arg3: memref<2x3x128xi32, #tpu.memory_space<vmem>>, %arg4: memref<6x32x128xf32, #tpu.memory_space<vmem>>, %arg5: memref<1x128xf32, #tpu.memory_space<vmem>>) attributes {dimension_semantics = [#tpu.dimension_semantics<parallel>], iteration_bounds = array<i64: 1>, scalar_prefetch = 0 : i64, scratch_operands = 0 : i64, tpu.core_type = #tpu.core_type<tc>, window_params = [{transform_indices = @transform_0, window_bounds = array<i64: 3>}, {transform_indices = @transform_1, window_bounds = array<i64: 3>}, {transform_indices = @transform_2, window_bounds = array<i64: 2, 3, 128>}, {pipeline_mode = #tpu.pipeline_mode<synchronous>, transform_indices = @transform_3, window_bounds = array<i64: 6, 32, 128>}, {transform_indices = @transform_4, window_bounds = array<i64: 1, 128>}]} {
    %c0 = arith.constant 0 : index
    %c0_0 = arith.constant 0 : index
    %c0_1 = arith.constant 0 : index
    %0 = vector.load %arg3[%c0, %c0_0, %c0_1] : memref<2x3x128xi32, #tpu.memory_space<vmem>>, vector<2x3x128xi32>
    %1 = tpu.iota {dimensions = array<i32: 0>} : vector<128x128xi32>
    %cst = arith.constant 0.000000e+00 : f32
    %2 = vector.broadcast %cst : f32 to vector<32x128xf32>
    %cst_2 = arith.constant 0.000000e+00 : f32
    %3 = vector.broadcast %cst_2 : f32 to vector<32x128xf32>
    %4 = vector.extract_strided_slice %0 {offsets = [0, 0, 0], sizes = [1, 1, 128], strides = [1, 1, 1]} : vector<2x3x128xi32> to vector<1x1x128xi32>
    %5 = vector.shape_cast %4 : vector<1x1x128xi32> to vector<128xi32>
    %6 = vector.shape_cast %5 : vector<128xi32> to vector<1x128xi32>
    %7 = vector.broadcast %6 : vector<1x128xi32> to vector<128x128xi32>
    %8 = arith.cmpi eq, %1, %7 : vector<128x128xi32>
    %c0_3 = arith.constant 0 : index
    %9 = memref.load %arg1[%c0_3] : memref<3xf32, #tpu.memory_space<smem>>
    %cst_4 = arith.constant 0.000000e+00 : f32
    %10 = vector.broadcast %9 : f32 to vector<128x128xf32>
    %11 = vector.broadcast %cst_4 : f32 to vector<128x128xf32>
    %12 = arith.select %8, %10, %11 : vector<128x128xi1>, vector<128x128xf32>
    %13 = vector.extract_strided_slice %0 {offsets = [1, 0, 0], sizes = [1, 1, 128], strides = [1, 1, 1]} : vector<2x3x128xi32> to vector<1x1x128xi32>
    %14 = vector.shape_cast %13 : vector<1x1x128xi32> to vector<128xi32>
    %15 = vector.shape_cast %14 : vector<128xi32> to vector<1x128xi32>
    %16 = vector.broadcast %15 : vector<1x128xi32> to vector<128x128xi32>
    %17 = arith.cmpi eq, %1, %16 : vector<128x128xi32>
    %c0_5 = arith.constant 0 : index
    %18 = memref.load %arg2[%c0_5] : memref<3xf32, #tpu.memory_space<smem>>
    %cst_6 = arith.constant 0.000000e+00 : f32
    %19 = vector.broadcast %18 : f32 to vector<128x128xf32>
    %20 = vector.broadcast %cst_6 : f32 to vector<128x128xf32>
    %21 = arith.select %17, %19, %20 : vector<128x128xi1>, vector<128x128xf32>
    %c0_7 = arith.constant 0 : index
    %c0_8 = arith.constant 0 : index
    %c0_9 = arith.constant 0 : index
    %22 = vector.load %arg4[%c0_7, %c0_8, %c0_9] : memref<6x32x128xf32, #tpu.memory_space<vmem>>, vector<1x32x128xf32>
    %23 = vector.shape_cast %22 : vector<1x32x128xf32> to vector<32x128xf32>
    %cst_10 = arith.constant dense<0.000000e+00> : vector<32x128xf32>
    %24 = tpu.matmul %23, %12, %cst_10 {dimension_numbers = #tpu.dot_dimension_numbers<[1], [0], [0], [1], [0, 0, 1, 1], [], []>} : vector<32x128xf32>, vector<128x128xf32>, vector<32x128xf32> -> vector<32x128xf32>
    %25 = arith.addf %2, %24 : vector<32x128xf32>
    %c3 = arith.constant 3 : index
    %c0_11 = arith.constant 0 : index
    %c0_12 = arith.constant 0 : index
    %26 = vector.load %arg4[%c3, %c0_11, %c0_12] : memref<6x32x128xf32, #tpu.memory_space<vmem>>, vector<1x32x128xf32>
    %27 = vector.shape_cast %26 : vector<1x32x128xf32> to vector<32x128xf32>
    %cst_13 = arith.constant dense<0.000000e+00> : vector<32x128xf32>
    %28 = tpu.matmul %27, %21, %cst_13 {dimension_numbers = #tpu.dot_dimension_numbers<[1], [0], [0], [1], [0, 0, 1, 1], [], []>} : vector<32x128xf32>, vector<128x128xf32>, vector<32x128xf32> -> vector<32x128xf32>
    %29 = arith.addf %3, %28 : vector<32x128xf32>
    %30 = vector.extract_strided_slice %0 {offsets = [0, 1, 0], sizes = [1, 1, 128], strides = [1, 1, 1]} : vector<2x3x128xi32> to vector<1x1x128xi32>
    %31 = vector.shape_cast %30 : vector<1x1x128xi32> to vector<128xi32>
    %32 = vector.shape_cast %31 : vector<128xi32> to vector<1x128xi32>
    %33 = vector.broadcast %32 : vector<1x128xi32> to vector<128x128xi32>
    %34 = arith.cmpi eq, %1, %33 : vector<128x128xi32>
    %c1 = arith.constant 1 : index
    %35 = memref.load %arg1[%c1] : memref<3xf32, #tpu.memory_space<smem>>
    %cst_14 = arith.constant 0.000000e+00 : f32
    %36 = vector.broadcast %35 : f32 to vector<128x128xf32>
    %37 = vector.broadcast %cst_14 : f32 to vector<128x128xf32>
    %38 = arith.select %34, %36, %37 : vector<128x128xi1>, vector<128x128xf32>
    %39 = vector.extract_strided_slice %0 {offsets = [1, 1, 0], sizes = [1, 1, 128], strides = [1, 1, 1]} : vector<2x3x128xi32> to vector<1x1x128xi32>
    %40 = vector.shape_cast %39 : vector<1x1x128xi32> to vector<128xi32>
    %41 = vector.shape_cast %40 : vector<128xi32> to vector<1x128xi32>
    %42 = vector.broadcast %41 : vector<1x128xi32> to vector<128x128xi32>
    %43 = arith.cmpi eq, %1, %42 : vector<128x128xi32>
    %c1_15 = arith.constant 1 : index
    %44 = memref.load %arg2[%c1_15] : memref<3xf32, #tpu.memory_space<smem>>
    %cst_16 = arith.constant 0.000000e+00 : f32
    %45 = vector.broadcast %44 : f32 to vector<128x128xf32>
    %46 = vector.broadcast %cst_16 : f32 to vector<128x128xf32>
    %47 = arith.select %43, %45, %46 : vector<128x128xi1>, vector<128x128xf32>
    %c1_17 = arith.constant 1 : index
    %c0_18 = arith.constant 0 : index
    %c0_19 = arith.constant 0 : index
    %48 = vector.load %arg4[%c1_17, %c0_18, %c0_19] : memref<6x32x128xf32, #tpu.memory_space<vmem>>, vector<1x32x128xf32>
    %49 = vector.shape_cast %48 : vector<1x32x128xf32> to vector<32x128xf32>
    %cst_20 = arith.constant dense<0.000000e+00> : vector<32x128xf32>
    %50 = tpu.matmul %49, %38, %cst_20 {dimension_numbers = #tpu.dot_dimension_numbers<[1], [0], [0], [1], [0, 0, 1, 1], [], []>} : vector<32x128xf32>, vector<128x128xf32>, vector<32x128xf32> -> vector<32x128xf32>
    %51 = arith.addf %25, %50 : vector<32x128xf32>
    %c4 = arith.constant 4 : index
    %c0_21 = arith.constant 0 : index
    %c0_22 = arith.constant 0 : index
    %52 = vector.load %arg4[%c4, %c0_21, %c0_22] : memref<6x32x128xf32, #tpu.memory_space<vmem>>, vector<1x32x128xf32>
    %53 = vector.shape_cast %52 : vector<1x32x128xf32> to vector<32x128xf32>
    %cst_23 = arith.constant dense<0.000000e+00> : vector<32x128xf32>
    %54 = tpu.matmul %53, %47, %cst_23 {dimension_numbers = #tpu.dot_dimension_numbers<[1], [0], [0], [1], [0, 0, 1, 1], [], []>} : vector<32x128xf32>, vector<128x128xf32>, vector<32x128xf32> -> vector<32x128xf32>
    %55 = arith.addf %29, %54 : vector<32x128xf32>
    %56 = vector.extract_strided_slice %0 {offsets = [0, 2, 0], sizes = [1, 1, 128], strides = [1, 1, 1]} : vector<2x3x128xi32> to vector<1x1x128xi32>
    %57 = vector.shape_cast %56 : vector<1x1x128xi32> to vector<128xi32>
    %58 = vector.shape_cast %57 : vector<128xi32> to vector<1x128xi32>
    %59 = vector.broadcast %58 : vector<1x128xi32> to vector<128x128xi32>
    %60 = arith.cmpi eq, %1, %59 : vector<128x128xi32>
    %c2 = arith.constant 2 : index
    %61 = memref.load %arg1[%c2] : memref<3xf32, #tpu.memory_space<smem>>
    %cst_24 = arith.constant 0.000000e+00 : f32
    %62 = vector.broadcast %61 : f32 to vector<128x128xf32>
    %63 = vector.broadcast %cst_24 : f32 to vector<128x128xf32>
    %64 = arith.select %60, %62, %63 : vector<128x128xi1>, vector<128x128xf32>
    %65 = vector.extract_strided_slice %0 {offsets = [1, 2, 0], sizes = [1, 1, 128], strides = [1, 1, 1]} : vector<2x3x128xi32> to vector<1x1x128xi32>
    %66 = vector.shape_cast %65 : vector<1x1x128xi32> to vector<128xi32>
    %67 = vector.shape_cast %66 : vector<128xi32> to vector<1x128xi32>
    %68 = vector.broadcast %67 : vector<1x128xi32> to vector<128x128xi32>
    %69 = arith.cmpi eq, %1, %68 : vector<128x128xi32>
    %c2_25 = arith.constant 2 : index
    %70 = memref.load %arg2[%c2_25] : memref<3xf32, #tpu.memory_space<smem>>
    %cst_26 = arith.constant 0.000000e+00 : f32
    %71 = vector.broadcast %70 : f32 to vector<128x128xf32>
    %72 = vector.broadcast %cst_26 : f32 to vector<128x128xf32>
    %73 = arith.select %69, %71, %72 : vector<128x128xi1>, vector<128x128xf32>
    %c2_27 = arith.constant 2 : index
    %c0_28 = arith.constant 0 : index
    %c0_29 = arith.constant 0 : index
    %74 = vector.load %arg4[%c2_27, %c0_28, %c0_29] : memref<6x32x128xf32, #tpu.memory_space<vmem>>, vector<1x32x128xf32>
    %75 = vector.shape_cast %74 : vector<1x32x128xf32> to vector<32x128xf32>
    %cst_30 = arith.constant dense<0.000000e+00> : vector<32x128xf32>
    %76 = tpu.matmul %75, %64, %cst_30 {dimension_numbers = #tpu.dot_dimension_numbers<[1], [0], [0], [1], [0, 0, 1, 1], [], []>} : vector<32x128xf32>, vector<128x128xf32>, vector<32x128xf32> -> vector<32x128xf32>
    %77 = arith.addf %51, %76 : vector<32x128xf32>
    %c5 = arith.constant 5 : index
    %c0_31 = arith.constant 0 : index
    %c0_32 = arith.constant 0 : index
    %78 = vector.load %arg4[%c5, %c0_31, %c0_32] : memref<6x32x128xf32, #tpu.memory_space<vmem>>, vector<1x32x128xf32>
    %79 = vector.shape_cast %78 : vector<1x32x128xf32> to vector<32x128xf32>
    %cst_33 = arith.constant dense<0.000000e+00> : vector<32x128xf32>
    %80 = tpu.matmul %79, %73, %cst_33 {dimension_numbers = #tpu.dot_dimension_numbers<[1], [0], [0], [1], [0, 0, 1, 1], [], []>} : vector<32x128xf32>, vector<128x128xf32>, vector<32x128xf32> -> vector<32x128xf32>
    %81 = arith.addf %55, %80 : vector<32x128xf32>
    %82 = arith.mulf %77, %81 : vector<32x128xf32>
    %cst_34 = arith.constant dense<0.000000e+00> : vector<128xf32>
    %83 = vector.multi_reduction <add>, %82, %cst_34 [0] : vector<32x128xf32> to vector<128xf32>
    %84 = vector.shape_cast %83 : vector<128xf32> to vector<1x128xf32>
    %85 = arith.negf %84 : vector<1x128xf32>
    %86 = math.exp %85 : vector<1x128xf32>
    %cst_35 = arith.constant 1.000000e+00 : f32
    %87 = vector.broadcast %cst_35 : f32 to vector<1x128xf32>
    %88 = arith.addf %87, %86 : vector<1x128xf32>
    %89 = arith.divf %87, %88 : vector<1x128xf32>
    %c0_36 = arith.constant 0 : index
    %c0_37 = arith.constant 0 : index
    %90 = vector.load %arg5[%c0_36, %c0_37] : memref<1x128xf32, #tpu.memory_space<vmem>>, vector<1x128xf32>
    tpu.vector_store %arg5[%c0_36, %c0_37], %89 {strides = array<i32>} : memref<1x128xf32, #tpu.memory_space<vmem>>, vector<1x128xf32>,
    return
  }
  func.func @transform_0(%arg0: i32) -> i32 {
    %c0_i32 = arith.constant 0 : i32
    %c0_i32_0 = arith.constant 0 : i32
    return %c0_i32 : i32
  }
  func.func @transform_1(%arg0: i32) -> i32 {
    %c0_i32 = arith.constant 0 : i32
    %c0_i32_0 = arith.constant 0 : i32
    return %c0_i32 : i32
  }
  func.func @transform_2(%arg0: i32) -> (i32, i32, i32) {
    %c0_i32 = arith.constant 0 : i32
    %c0_i32_0 = arith.constant 0 : i32
    %c0_i32_1 = arith.constant 0 : i32
    return %c0_i32, %c0_i32_0, %arg0 : i32, i32, i32
  }
  func.func @transform_3(%arg0: i32) -> (i32, i32, i32) {
    %c0_i32 = arith.constant 0 : i32
    %c0_i32_0 = arith.constant 0 : i32
    %c0_i32_1 = arith.constant 0 : i32
    %c0_i32_2 = arith.constant 0 : i32
    return %c0_i32, %c0_i32_0, %c0_i32_1 : i32, i32, i32
  }
  func.func @transform_4(%arg0: i32) -> (i32, i32) {
    %c0_i32 = arith.constant 0 : i32
    %c0_i32_0 = arith.constant 0 : i32
    return %c0_i32, %arg0 : i32, i32
  }
}

</mosaic_0001>

<bundles_post_ra>
// kernel: tpu_custom_call.1
= control target key start
LH: loop header
LB: loop body
LE: loop exit
PB: predicated region body
PF: predicated region fallthrough
CT: control target
= control target key end

     0   :  { %9 = vsyncpa [#allocation5], 0  ;;  %s2542_s0 = inlined_call_operand.vmem [shape: f32[3], index: 0, kind: input, shape index: {}]   ;;  %s2543_s1 = inlined_call_operand.vmem [shape: f32[3], index: 1, kind: input, shape index: {}]   ;;  %s2544_s2 = inlined_call_operand.vmem [shape: s32[2,3,128], index: 2, kind: input, shape index: {}]   ;;  %s2545_s3 = inlined_call_operand.hbm [shape: f32[6,32,128], index: 3, kind: input, shape index: {}]   ;;  %s2546_s4 = inlined_call_operand.hbm [shape: f32[1,128], index: 4, kind: output, shape index: {}]  }
   0x1   :  { %10 = vsyncpa [#allocation7], 0 }
   0x2   :  { %11 = vsyncpa [#allocation3], 0 }
   0x3   :  { %12 = vsyncpa [#allocation4], 0  ;;  %s19_s17 = sshll.u32 %s2542_s0, 4  ;;  %s29_s20 = sshll.u32 %s2543_s1, 4  ;;  %s20_s17 = int_to_ptr.vmem [resolvable:$true] %s19_s17  ;;  %s30_s20 = int_to_ptr.vmem [resolvable:$true] %s29_s20 }
   0x4   :  { %s1651_s21 = scalar_lea.vmem %s20_s17, 16  ;;  %p1656_p1 = scmp.lt.s32.totalorder %s20_s17, %s20_s17 }
   0x5   :  { %p1652_p0 = scmp.ne.s32.totalorder %s20_s17, %s1651_s21  ;;  %p1657_p2 = scmp.lt.s32.totalorder %s1651_s21, %s1651_s21 }
   0x7   :  { %p1658_p3 = por %p1657_p2, %p1656_p1 }
   0x9   :  { %p1659_p4 = pnand %p1658_p3, %p1652_p0 }
   0xb   :  { %1662 = shalt.err (!%p1659_p4)
}
   0xc   :  { %s1727_s22 = smov [#allocation2]   ;;  %s1663_s23 = scalar_lea.vmem %s30_s20, 16 }
   0xd   :  { %22 = dma.vmem_to_smem %s20_s17, 16, %s1727_s22, [#allocation5]  }
   0xe   :  { %p1664_p5 = scmp.ne.s32.totalorder %s30_s20, %s1663_s23  ;;  %p1668_p6 = scmp.lt.s32.totalorder %s30_s20, %s30_s20 }
   0xf   :  { %p1669_p7 = scmp.lt.s32.totalorder %s1663_s23, %s1663_s23 }
  0x11   :  { %p1670_p8 = por %p1669_p7, %p1668_p6 }
  0x13   :  { %p1671_p9 = pnand %p1670_p8, %p1664_p5 }
  0x15   :  { %1674 = shalt.err (!%p1671_p9)
}
  0x16   :  { %s1728_s0 = smov [#allocation6]   ;;  %s1729_s1 = smov [#allocation8]  }
  0x17   :  { %32 = dma.vmem_to_smem %s30_s20, 16, %s1728_s0, [#allocation7]  }
  0x18   :  { %s40_s24 = sshll.u32 %s1729_s1, 4  ;;  %s1675_s27 = scalar_lea.hbm %s2545_s3, 3072  ;;  %s41_s24 = int_to_ptr.vmem [resolvable:$true] %s40_s24 }
  0x19   :  { %p1676_p10 = scmp.ne.s32.totalorder %s2545_s3, %s1675_s27  ;;  %p1679_p11 = scmp.lt.u32.totalorder %s1675_s27, %s2545_s3 }
  0x1b   :  { %p1681_p12 = pnand %p1679_p11, %p1676_p10 }
  0x1d   :  { %1684 = shalt.err (!%p1681_p12)
}
  0x1e   :  { %s1685_s6 = scalar_lea.vmem %s41_s24, 3072  ;;  %p1690_p0 = scmp.lt.s32.totalorder %s41_s24, %s41_s24 }
  0x1f   :  { %p1686_p13 = scmp.ne.s32.totalorder %s41_s24, %s1685_s6  ;;  %p1691_p1 = scmp.lt.s32.totalorder %s1685_s6, %s1685_s6 }
  0x21   :  { %p1692_p2 = por %p1691_p1, %p1690_p0 }
  0x23   :  { %p1693_p3 = pnand %p1692_p2, %p1686_p13 }
  0x25   :  { %1696 = shalt.err (!%p1693_p3)
}
  0x26   :  { %s1730_s7 = smov 128   ;;  %s1731_s8 = smov 8  }
  0x27   :  { %46 = dma.hbm_to_vmem [thread:$0]  %s2545_s3, 3072, %s41_s24, [#allocation3], %s1730_s7, %s1730_s7, %s1731_s8  }
  0x28   :  { %1719 = dma.done.wait [#allocation5], 16  }
  0x29   :  { %1720 = vsyncadd [#allocation5], 4294967280 }
  0x2a   :  { %1721 = dma.done.wait [#allocation7], 16  }
  0x2b   :  { %1722 = vsyncadd [#allocation7], 4294967280 }
  0x2c   :  { %1723 = dma.done.wait [#allocation3], 3072  }
  0x2d   :  { %1724 = vsyncadd [#allocation3], 4294964224 }
  0x2e   :  { %56 = sfence }
  0x2f   :  { %v59_v0 = vlaneseq  ;;  %s888_s11 = sld [smem:[#allocation2 + $0x1]]  ;;  %v238_v1 = vld [vmem:[#allocation8 + $0x20] sm:$0xff]  ;;  %s1969_s16 = sld [smem:[#allocation6]]  ;;  %v239_v54 = vld [vmem:[#allocation8 + $0x28] sm:$0xff]  ;;  %v240_v60 = vld [vmem:[#allocation8 + $0x30] sm:$0xff]  ;;  %v2600_v61 = vmov 0 }
  0x30   :  { %s889_s12 = sld [smem:[#allocation6 + $0x1]]  ;;  %v413_v2 = vld [vmem:[#allocation8 + $0x80] sm:$0xff]  ;;  %1141 = vmatprep.mubr.f32.mxu0 %v238_v1  ;;  %v414_v56 = vld [vmem:[#allocation8 + $0x88] sm:$0xff]  ;;  %v415_v62 = vld [vmem:[#allocation8 + $0x90] sm:$0xff]  ;;  %s954_s17 = sld [smem:[#allocation2 + $0x2]] }
  0x31   :  { %v1776_v3 = vshrl.u32 %v59_v0, 7  ;;  %1217 = vmatprep.mubr.f32.mxu1 %v413_v2  ;;  %v1781_v4 = vld [vmem:[%s2544_s2] sm:$0x7]  ;;  %v1786_v5 = vld [vmem:[%s2544_s2 + $0x4] sm:$0x7]  ;;  %s1953_s2 = sld [smem:[#allocation2]] }
  0x32   :  { %v241_v63 = vld [vmem:[#allocation8 + $0x38] sm:$0xff]  ;;  %v2604_v0 = vmov 0  ;;  %v2607_v2 = vmov 0  ;;  %s955_s18 = sld [smem:[#allocation6 + $0x2]]  ;;  %v154_v29 = vld [vmem:[#allocation8 + $0x10] sm:$0xff]  ;;  %v664_v33 = vld [vmem:[#allocation8 + $0x40] sm:$0xff] }
  0x33   :  { %v1789_v6 = vadd.s32 8, %v1776_v3  ;;  %v163_v7 = vsub.s32 1, %v1776_v3  ;;  %v1793_v8 = vadd.s32 16, %v1776_v3  ;;  %v1796_v9 = vadd.s32 24, %v1776_v3  ;;  %v416_v1 = vld [vmem:[#allocation8 + $0x98] sm:$0xff]  ;;  %v758_v34 = vld [vmem:[#allocation8 + $0xa0] sm:$0xff] }
  0x34   :  { %v1799_v10 = vadd.s32 32, %v1776_v3  ;;  %v1808_v14 = vadd.s32 40, %v1776_v3  ;;  %v1813_v17 = vadd.s32 48, %v1776_v3  ;;  %v1839_v19 = vadd.s32 56, %v1776_v3  ;;  %v760_v38 = vld [vmem:[#allocation8 + $0xb0] sm:$0xff]  ;;  %v761_v40 = vld [vmem:[#allocation8 + $0xb8] sm:$0xff] }
  0x35   :  { %v1802_v11 = vrot.slane %v1781_v4, %v163_v7  ;;  %v182_v12 = vstv %s888_s11  ;;  %v1805_v13 = vrot.slane %v1786_v5, %v163_v7  ;;  %v1863_v22 = vadd.s32 64, %v1776_v3  ;;  %s1732_s19 = smov [#allocation9]  }
  0x36   :  { %v1810_v15 = vpack.c.bf16 %v182_v12, %v182_v12  ;;  %v220_v16 = vstv %s889_s12  ;;  %v1866_v23 = vadd.s32 72, %v1776_v3  ;;  %v1893_v26 = vadd.s32 80, %v1776_v3  ;;  %s877_s20 = sshll.u32 %s1732_s19, 4  ;;  %s878_s20 = int_to_ptr.vmem [resolvable:$true] %s877_s20 }
  0x37   :  { %vm165_vm0 = vcmp.eq.s32.totalorder %v1776_v3, %v1802_v11  ;;  %vm166_vm1 = vcmp.eq.s32.totalorder %v1789_v6, %v1802_v11  ;;  %vm203_vm2 = vcmp.eq.s32.totalorder %v1776_v3, %v1805_v13  ;;  %vm204_vm3 = vcmp.eq.s32.totalorder %v1789_v6, %v1805_v13  ;;  %s1697_s21 = scalar_lea.vmem %s878_s20, 16  ;;  %s1701_s22 = scalar_lea.vmem %s878_s20, 32 }
  0x38   :  { %vm1338_vm4 = vmpackc.low %vm166_vm1, %vm165_vm0  ;;  %v1823_v18 = vpack.c.bf16 %v220_v16, %v220_v16  ;;  %vm167_vm5 = vcmp.eq.s32.totalorder %v1793_v8, %v1802_v11  ;;  %vm168_vm6 = vcmp.eq.s32.totalorder %v1796_v9, %v1802_v11  ;;  %vm205_vm7 = vcmp.eq.s32.totalorder %v1793_v8, %v1805_v13  ;;  %p1698_p4 = scmp.ne.s32.totalorder %s878_s20, %s1697_s21  ;;  %p1702_p5 = scmp.lt.s32.totalorder %s878_s20, %s878_s20 }
  0x39   :  { %1339 = vmatprep.subr.msk.bf16.mxu0 %vm1338_vm4, %v1810_v15  ;;  %vm1434_vm8 = vmpackc.low %vm204_vm3, %vm203_vm2  ;;  %vm206_vm9 = vcmp.eq.s32.totalorder %v1796_v9, %v1805_v13  ;;  %vm169_vm10 = vcmp.eq.s32.totalorder %v1799_v10, %v1802_v11  ;;  %vm170_vm11 = vcmp.eq.s32.totalorder %v1808_v14, %v1802_v11  ;;  %vm207_vm13 = vcmp.eq.s32.totalorder %v1799_v10, %v1805_v13  ;;  %p1703_p6 = scmp.lt.s32.totalorder %s1701_s22, %s1697_s21 }
  0x3a   :  { %1435 = vmatprep.subr.msk.bf16.mxu1 %vm1434_vm8, %v1823_v18  ;;  %1342 = vmatpush3.bf16.msk.msra.mxu0 %vm1338_vm4, %v1810_v15  ;;  %vm1344_vm12 = vmpackc.low %vm168_vm6, %vm167_vm5  ;;  %vm208_vm14 = vcmp.eq.s32.totalorder %v1808_v14, %v1805_v13  ;;  %vm171_vm2 = vcmp.eq.s32.totalorder %v1813_v17, %v1802_v11  ;;  %vm172_vm3 = vcmp.eq.s32.totalorder %v1839_v19, %v1802_v11  ;;  %v1896_v27 = vadd.s32 88, %v1776_v3 }
  0x3b   :  { %1438 = vmatpush3.bf16.msk.msra.mxu1 %vm1434_vm8, %v1823_v18  ;;  %1345 = vmatprep.subr.msk.bf16.mxu0 %vm1344_vm12, %v1810_v15  ;;  %vm1440_vm15 = vmpackc.low %vm206_vm9, %vm205_vm7  ;;  %vm209_vm4 = vcmp.eq.s32.totalorder %v1813_v17, %v1805_v13  ;;  %vm210_vm5 = vcmp.eq.s32.totalorder %v1839_v19, %v1805_v13  ;;  %vm173_vm8 = vcmp.eq.s32.totalorder %v1863_v22, %v1802_v11  ;;  %v1927_v30 = vadd.s32 96, %v1776_v3  ;;  %p1704_p7 = por %p1703_p6, %p1702_p5 }
  0x3c   :  { %1441 = vmatprep.subr.msk.bf16.mxu1 %vm1440_vm15, %v1823_v18  ;;  %vm1850_vm0 = vmpackc.low %vm170_vm11, %vm169_vm10  ;;  %vm174_vm9 = vcmp.eq.s32.totalorder %v1866_v23, %v1802_v11  ;;  %vm211_vm10 = vcmp.eq.s32.totalorder %v1863_v22, %v1805_v13  ;;  %vm212_vm11 = vcmp.eq.s32.totalorder %v1866_v23, %v1805_v13  ;;  %v1930_v31 = vadd.s32 104, %v1776_v3 }
  0x3d   :  { %vm1854_vm1 = vmpackc.low %vm208_vm14, %vm207_vm13  ;;  %vm175_vm14 = vcmp.eq.s32.totalorder %v1893_v26, %v1802_v11  ;;  %v78_v32 = vsub.s32 0, %v1776_v3  ;;  %v1964_v35 = vadd.s32 112, %v1776_v3  ;;  %v1967_v36 = vadd.s32 120, %v1776_v3  ;;  %p1705_p8 = pnand %p1704_p7, %p1698_p4 }
  0x3e   :  { %1348 = vmatpush3.bf16.msk.msra.mxu0 %vm1344_vm12, %v1810_v15  ;;  %vm1880_vm6 = vmpackc.low %vm172_vm3, %vm171_vm2  ;;  %v589_v41 = vsub.s32 2, %v1776_v3  ;;  %v97_v43 = vstv %s1953_s2  ;;  %v135_v45 = vstv %s1969_s16  ;;  %v2618_v7 = vmov 0 }
  0x3f   :  { %1444 = vmatpush3.bf16.msk.msra.mxu1 %vm1440_vm15, %v1823_v18  ;;  %1351 = vmatprep.subr.msk.bf16.mxu0 %vm1850_vm0, %v1810_v15  ;;  %vm1884_vm7 = vmpackc.low %vm210_vm5, %vm209_vm4  ;;  %vm176_vm15 = vcmp.eq.s32.totalorder %v1896_v27, %v1802_v11  ;;  %vm177_vm4 = vcmp.eq.s32.totalorder %v1927_v30, %v1802_v11  ;;  %vm178_vm5 = vcmp.eq.s32.totalorder %v1930_v31, %v1802_v11  ;;  %v2630_v12 = vmov 0 }
  0x40   :  { %1447 = vmatprep.subr.msk.bf16.mxu1 %vm1854_vm1, %v1823_v18  ;;  %vm1914_vm12 = vmpackc.low %vm174_vm9, %vm173_vm8  ;;  %v1985_v37 = vrot.slane %v1781_v4, %v78_v32  ;;  %v1995_v39 = vrot.slane %v1786_v5, %v78_v32  ;;  %v2056_v47 = vrot.slane %v1786_v5, %v589_v41  ;;  %v2064_v48 = vpack.c.bf16 %v97_v43, %v97_v43  ;;  %v160_v32 = vld [vmem:[#allocation8 + $0x78] sm:$0xff] }
  0x41   :  { %vm1918_vm13 = vmpackc.low %vm212_vm11, %vm211_vm10  ;;  %vm179_vm10 = vcmp.eq.s32.totalorder %v1964_v35, %v1802_v11  ;;  %vm180_vm11 = vcmp.eq.s32.totalorder %v1967_v36, %v1802_v11  ;;  %v2077_v50 = vpack.c.bf16 %v135_v45, %v135_v45  ;;  %v2099_v53 = vrot.slane %v1781_v4, %v589_v41  ;;  %v157_v11 = vld [vmem:[#allocation8 + $0x60] sm:$0xff] }
  0x42   :  { %1354 = vmatpush3.bf16.msk.msra.mxu0 %vm1850_vm0, %v1810_v15  ;;  %vm213_vm0 = vcmp.eq.s32.totalorder %v1893_v26, %v1805_v13  ;;  %vm1949_vm2 = vmpackc.low %vm176_vm15, %vm175_vm14  ;;  %vm80_vm14 = vcmp.eq.s32.totalorder %v1776_v3, %v1985_v37  ;;  %vm81_vm15 = vcmp.eq.s32.totalorder %v1789_v6, %v1985_v37  ;;  %v2614_v5 = vmov 0 }
  0x43   :  { %1450 = vmatpush3.bf16.msk.msra.mxu1 %vm1854_vm1, %v1823_v18  ;;  %1357 = vmatprep.subr.msk.bf16.mxu0 %vm1880_vm6, %v1810_v15  ;;  %vm214_vm1 = vcmp.eq.s32.totalorder %v1896_v27, %v1805_v13  ;;  %vm1990_vm8 = vmpackc.low %vm178_vm5, %vm177_vm4  ;;  %vm82_vm4 = vcmp.eq.s32.totalorder %v1793_v8, %v1985_v37  ;;  %vm83_vm5 = vcmp.eq.s32.totalorder %v1796_v9, %v1985_v37  ;;  %v2639_v16 = vmov 0 }
  0x44   :  { %1453 = vmatprep.subr.msk.bf16.mxu1 %vm1884_vm7, %v1823_v18  ;;  %vm1955_vm3 = vmpackc.low %vm214_vm1, %vm213_vm0  ;;  %vm118_vm1 = vcmp.eq.s32.totalorder %v1776_v3, %v1995_v39  ;;  %v608_v25 = vstv %s954_s17 }
  0x45   :  { %vm2026_vm0 = vmpackc.low %vm180_vm11, %vm179_vm10  ;;  %vm121_vm10 = vcmp.eq.s32.totalorder %v1796_v9, %v1995_v39  ;;  %vm84_vm11 = vcmp.eq.s32.totalorder %v1799_v10, %v1985_v37 }
  0x46   :  { %1360 = vmatpush3.bf16.msk.msra.mxu0 %vm1880_vm6, %v1810_v15  ;;  %vm215_vm6 = vcmp.eq.s32.totalorder %v1927_v30, %v1805_v13 }
  0x47   :  { %1456 = vmatpush3.bf16.msk.msra.mxu1 %vm1884_vm7, %v1823_v18  ;;  %1363 = vmatprep.subr.msk.bf16.mxu0 %vm1914_vm12, %v1810_v15  ;;  %vm216_vm7 = vcmp.eq.s32.totalorder %v1930_v31, %v1805_v13 }
  0x48   :  { %1459 = vmatprep.subr.msk.bf16.mxu1 %vm1918_vm13, %v1823_v18  ;;  %vm1997_vm9 = vmpackc.low %vm216_vm7, %vm215_vm6  ;;  %vm120_vm7 = vcmp.eq.s32.totalorder %v1793_v8, %v1995_v39 }
  0x49   :  { %vm2047_vm6 = vmpackc.low %vm81_vm15, %vm80_vm14  ;;  %vm123_vm14 = vcmp.eq.s32.totalorder %v1808_v14, %v1995_v39 }
  0x4a   :  { %1366 = vmatpush3.bf16.msk.msra.mxu0 %vm1914_vm12, %v1810_v15  ;;  %vm217_vm12 = vcmp.eq.s32.totalorder %v1964_v35, %v1805_v13  ;;  %vm2090_vm15 = vmpackc.low %vm121_vm10, %vm120_vm7  ;;  %vm125_vm7 = vcmp.eq.s32.totalorder %v1839_v19, %v1995_v39  ;;  %vm629_vm10 = vcmp.eq.s32.totalorder %v1776_v3, %v2056_v47 }
  0x4b   :  { %1462 = vmatpush3.bf16.msk.msra.mxu1 %vm1918_vm13, %v1823_v18  ;;  %1369 = vmatprep.subr.msk.bf16.mxu0 %vm1949_vm2, %v1810_v15  ;;  %vm218_vm13 = vcmp.eq.s32.totalorder %v1967_v36, %v1805_v13 }
  0x4c   :  { %1465 = vmatprep.subr.msk.bf16.mxu1 %vm1955_vm3, %v1823_v18 }
  0x4e   :  { %1372 = vmatpush3.bf16.msk.msra.mxu0 %vm1949_vm2, %v1810_v15  ;;  %vm119_vm2 = vcmp.eq.s32.totalorder %v1789_v6, %v1995_v39 }
  0x4f   :  { %1468 = vmatpush3.bf16.msk.msra.mxu1 %vm1955_vm3, %v1823_v18  ;;  %1375 = vmatprep.subr.msk.bf16.mxu0 %vm1990_vm8, %v1810_v15  ;;  %vm2035_vm3 = vmpackc.low %vm218_vm13, %vm217_vm12  ;;  %vm85_vm12 = vcmp.eq.s32.totalorder %v1808_v14, %v1985_v37  ;;  %vm122_vm13 = vcmp.eq.s32.totalorder %v1799_v10, %v1995_v39 }
  0x50   :  { %1471 = vmatprep.subr.msk.bf16.mxu1 %vm1997_vm9, %v1823_v18 }
  0x52   :  { %1378 = vmatpush3.bf16.msk.msra.mxu0 %vm1990_vm8, %v1810_v15  ;;  %vm2066_vm8 = vmpackc.low %vm119_vm2, %vm118_vm1  ;;  %vm86_vm1 = vcmp.eq.s32.totalorder %v1813_v17, %v1985_v37  ;;  %vm630_vm2 = vcmp.eq.s32.totalorder %v1789_v6, %v2056_v47 }
  0x53   :  { %1474 = vmatpush3.bf16.msk.msra.mxu1 %vm1997_vm9, %v1823_v18  ;;  %1381 = vmatprep.subr.msk.bf16.mxu0 %vm2026_vm0, %v1810_v15  ;;  %vm2082_vm9 = vmpackc.low %vm83_vm5, %vm82_vm4  ;;  %vm124_vm5 = vcmp.eq.s32.totalorder %v1813_v17, %v1995_v39 }
  0x54   :  { %1477 = vmatprep.subr.msk.bf16.mxu1 %vm2035_vm3, %v1823_v18  ;;  %vm2104_vm4 = vmpackc.low %vm85_vm12, %vm84_vm11  ;;  %vm2595_vm12 = vcmp.eq.s32.totalorder %v1839_v19, %v1985_v37 }
  0x55   :  { %vm2175_vm11 = vmpackc.low %vm630_vm2, %vm629_vm10  ;;  %vm2602_vm2 = vcmp.eq.s32.totalorder %v1793_v8, %v2099_v53  ;;  %vm2603_vm10 = vcmp.eq.s32.totalorder %v1796_v9, %v2099_v53 }
  0x56   :  { %1384 = vmatpush3.bf16.msk.msra.mxu0 %vm2026_vm0, %v1810_v15  ;;  %vm2128_vm0 = vmpackc.low %vm123_vm14, %vm122_vm13  ;;  %v2601_v61 = vsel %vm2175_vm11, 4294967295, %v2600_v61  ;;  %vm637_vm14 = vcmp.eq.s32.totalorder %v1863_v22, %v2056_v47  ;;  %v2637_v15 = vmov 0 }
  0x57   :  { %1480 = vmatpush3.bf16.msk.msra.mxu1 %vm2035_vm3, %v1823_v18  ;;  %1387 = vmatprep.subr.msk.bf16.mxu0 %vm2047_vm6, %v2064_v48  ;;  %vm2145_vm13 = vmpackc.low %vm2595_vm12, %vm86_vm1  ;;  %vm631_vm3 = vcmp.eq.s32.totalorder %v1793_v8, %v2056_v47  ;;  %vm89_vm12 = vcmp.eq.s32.totalorder %v1866_v23, %v1985_v37  ;;  %v152_v8 = vld [vmem:[#allocation8] sm:$0xff] }
  0x58   :  { %1483 = vmatprep.subr.msk.bf16.mxu1 %vm2066_vm8, %v2077_v50  ;;  %vm2161_vm1 = vmpackc.low %vm125_vm7, %vm124_vm5  ;;  %vm2609_vm7 = vcmp.eq.s32.totalorder %v1863_v22, %v1985_v37 }
  0x59   :  { %1142 = vmatmul.mubr.f32.vlgmr.msra.gmra.mrb[0].mxu0 %v239_v54  ;;  %vm2194_vm5 = vmpackc.low %vm2603_vm10, %vm2602_vm2  ;;  %vm2606_vm2 = vcmp.eq.s32.totalorder %v1796_v9, %v2056_v47  ;;  %v2622_v9 = vmov 0 }
  0x5a   :  { %1390 = vmatpush3.bf16.msk.msra.mxu0 %vm2047_vm6, %v2064_v48  ;;  %1218 = vmatmul.mubr.f32.vlgmr.msra.gmra.mrb[0].mxu1 %v414_v56  ;;  %v2605_v0 = vsel %vm2194_vm5, 4294967295, %v2604_v0  ;;  %vm2214_vm10 = vmpackc.low %vm2606_vm2, %vm631_vm3  ;;  %vm2612_vm2 = vcmp.eq.s32.totalorder %v1799_v10, %v2099_v53 }
  0x5b   :  { %1486 = vmatpush3.bf16.msk.msra.mxu1 %vm2066_vm8, %v2077_v50  ;;  %1393 = vmatprep.subr.msk.bf16.mxu0 %vm2082_vm9, %v2064_v48  ;;  %v2608_v2 = vsel %vm2214_vm10, 4294967295, %v2607_v2  ;;  %vm2231_vm3 = vmpackc.low %vm89_vm12, %vm2609_vm7  ;;  %vm2613_vm8 = vcmp.eq.s32.totalorder %v1808_v14, %v2099_v53  ;;  %vm2616_vm7 = vcmp.eq.s32.totalorder %v1863_v22, %v1995_v39  ;;  %vm2617_vm10 = vcmp.eq.s32.totalorder %v1866_v23, %v1995_v39 }
  0x5c   :  { %1489 = vmatprep.subr.msk.bf16.mxu1 %vm2090_vm15, %v2077_v50  ;;  %1144 = vmatprep.mubr.f32.mxu0 %v240_v60  ;;  %vm2241_vm6 = vmpackc.low %vm2613_vm8, %vm2612_vm2  ;;  %vm2620_vm8 = vcmp.eq.s32.totalorder %v1799_v10, %v2056_v47  ;;  %vm2621_vm2 = vcmp.eq.s32.totalorder %v1808_v14, %v2056_v47  ;;  %v2626_v10 = vmov 0  ;;  %v2635_v14 = vmov 0 }
  0x5d   :  { %v2615_v5 = vsel %vm2241_vm6, 4294967295, %v2614_v5  ;;  %vm2255_vm5 = vmpackc.low %vm2617_vm10, %vm2616_vm7  ;;  %1220 = vmatprep.mubr.f32.mxu1 %v415_v62  ;;  %1145 = vmatmul.mubr.f32.gmra.mrb[2].mxu0 %v241_v63  ;;  %vm600_vm10 = vcmp.eq.s32.totalorder %v1866_v23, %v2099_v53  ;;  %vm2624_vm7 = vcmp.eq.s32.totalorder %v1813_v17, %v2099_v53  ;;  %vm2632_vm6 = vcmp.eq.s32.totalorder %v1863_v22, %v2099_v53 }
  0x5e   :  { %v2619_v7 = vsel %vm2255_vm5, 4294967295, %v2618_v7  ;;  %vm2265_vm12 = vmpackc.low %vm2621_vm2, %vm2620_vm8  ;;  %1396 = vmatpush3.bf16.msk.msra.mxu0 %vm2082_vm9, %v2064_v48  ;;  %1221 = vmatmul.mubr.f32.gmra.mrb[2].mxu1 %v416_v1  ;;  %vm2625_vm8 = vcmp.eq.s32.totalorder %v1839_v19, %v2099_v53  ;;  %vm2628_vm9 = vcmp.eq.s32.totalorder %v1813_v17, %v2056_v47  ;;  %vm603_vm5 = vcmp.eq.s32.totalorder %v1927_v30, %v2099_v53 }
  0x5f   :  { %v2623_v9 = vsel %vm2265_vm12, 4294967295, %v2622_v9  ;;  %vm2282_vm2 = vmpackc.low %vm2625_vm8, %vm2624_vm7  ;;  %vm638_vm12 = vcmp.eq.s32.totalorder %v1866_v23, %v2056_v47  ;;  %1492 = vmatpush3.bf16.msk.msra.mxu1 %vm2090_vm15, %v2077_v50  ;;  %1399 = vmatprep.subr.msk.bf16.mxu0 %vm2104_vm4, %v2064_v48  ;;  %vm2629_vm7 = vcmp.eq.s32.totalorder %v1839_v19, %v2056_v47  ;;  %vm602_vm15 = vcmp.eq.s32.totalorder %v1896_v27, %v2099_v53 }
  0x60   :  { %v2627_v10 = vsel %vm2282_vm2, 4294967295, %v2626_v10  ;;  %vm2302_vm8 = vmpackc.low %vm2629_vm7, %vm2628_vm9  ;;  %vm601_vm2 = vcmp.eq.s32.totalorder %v1893_v26, %v2099_v53  ;;  %1495 = vmatprep.subr.msk.bf16.mxu1 %vm2128_vm0, %v2077_v50  ;;  %1179 = vmatprep.mubr.f32.mxu0 %v152_v8  ;;  %vm639_vm9 = vcmp.eq.s32.totalorder %v1893_v26, %v2056_v47  ;;  %vm640_vm7 = vcmp.eq.s32.totalorder %v1896_v27, %v2056_v47 }
  0x61   :  { %v2631_v12 = vsel %vm2302_vm8, 4294967295, %v2630_v12  ;;  %vm2316_vm11 = vmpackc.low %vm600_vm10, %vm2632_vm6  ;;  %1255 = vmatprep.mubr.f32.mxu1 %v157_v11  ;;  %vm604_vm6 = vcmp.eq.s32.totalorder %v1930_v31, %v2099_v53  ;;  %v2641_v17 = vmov 0 }
  0x62   :  { %vm2324_vm8 = vmpackc.low %vm638_vm12, %vm637_vm14  ;;  %1402 = vmatpush3.bf16.msk.msra.mxu0 %vm2104_vm4, %v2064_v48  ;;  %vm641_vm14 = vcmp.eq.s32.totalorder %v1927_v30, %v2056_v47  ;;  %vm642_vm12 = vcmp.eq.s32.totalorder %v1930_v31, %v2056_v47  ;;  %vm605_vm4 = vcmp.eq.s32.totalorder %v1964_v35, %v2099_v53 }
  0x63   :  { %v2636_v14 = vsel %vm2324_vm8, 4294967295, %v2635_v14  ;;  %vm2335_vm10 = vmpackc.low %vm602_vm15, %vm601_vm2  ;;  %1498 = vmatpush3.bf16.msk.msra.mxu1 %vm2128_vm0, %v2077_v50  ;;  %1405 = vmatprep.subr.msk.bf16.mxu0 %vm2145_vm13, %v2064_v48  ;;  %vm606_vm2 = vcmp.eq.s32.totalorder %v1967_v36, %v2099_v53  ;;  %vm643_vm0 = vcmp.eq.s32.totalorder %v1964_v35, %v2056_v47 }
  0x64   :  { %v2638_v15 = vsel %vm2335_vm10, 4294967295, %v2637_v15  ;;  %vm2349_vm8 = vmpackc.low %vm640_vm7, %vm639_vm9  ;;  %1501 = vmatprep.subr.msk.bf16.mxu1 %vm2161_vm1, %v2077_v50  ;;  %vm644_vm9 = vcmp.eq.s32.totalorder %v1967_v36, %v2056_v47  ;;  %vm90_vm7 = vcmp.eq.s32.totalorder %v1893_v26, %v1985_v37 }
  0x65   :  { %v2640_v16 = vsel %vm2349_vm8, 4294967295, %v2639_v16  ;;  %vm2360_vm15 = vmpackc.low %vm604_vm6, %vm603_vm5  ;;  %vm91_vm8 = vcmp.eq.s32.totalorder %v1896_v27, %v1985_v37  ;;  %vm128_vm5 = vcmp.eq.s32.totalorder %v1893_v26, %v1995_v39  ;;  %vm129_vm6 = vcmp.eq.s32.totalorder %v1896_v27, %v1995_v39 }
  0x66   :  { %v2642_v17 = vsel %vm2360_vm15, 4294967295, %v2641_v17  ;;  %vm2372_vm10 = vmpackc.low %vm642_vm12, %vm641_vm14  ;;  %1408 = vmatpush3.bf16.msk.msra.mxu0 %vm2145_vm13, %v2064_v48  ;;  %vm2649_vm13 = vnez %v2619_v7  ;;  %v646_v26 = vstv %s955_s18  ;;  %v1529_v27 = vpack.c.bf16 %v608_v25, %v608_v25 }
  0x67   :  { %vm2383_vm15 = vmpackc.low %vm606_vm2, %vm605_vm4  ;;  %1504 = vmatpush3.bf16.msk.msra.mxu1 %vm2161_vm1, %v2077_v50  ;;  %1411 = vmatprep.subr.msk.bf16.mxu0 %vm2231_vm3, %v2064_v48  ;;  %vm92_vm1 = vcmp.eq.s32.totalorder %v1927_v30, %v1985_v37  ;;  %vm93_vm2 = vcmp.eq.s32.totalorder %v1930_v31, %v1985_v37  ;;  %v1577_v28 = vpack.c.bf16 %v646_v26, %v646_v26 }
  0x68   :  { %vm2393_vm14 = vmpackc.low %vm644_vm9, %vm643_vm0  ;;  %1507 = vmatprep.subr.msk.bf16.mxu1 %vm2649_vm13, %v2077_v50  ;;  %vm131_vm0 = vcmp.eq.s32.totalorder %v1930_v31, %v1995_v39  ;;  %v155_v31 = vld [vmem:[#allocation8 + $0x18] sm:$0xff] }
  0x69   :  { %vm2400_vm12 = vmpackc.low %vm91_vm8, %vm90_vm7  ;;  %vm130_vm8 = vcmp.eq.s32.totalorder %v1927_v30, %v1995_v39  ;;  %vm94_vm7 = vcmp.eq.s32.totalorder %v1964_v35, %v1985_v37  ;;  %v159_v30 = vld [vmem:[#allocation8 + $0x70] sm:$0xff] }
  0x6a   :  { %vm2404_vm4 = vmpackc.low %vm129_vm6, %vm128_vm5  ;;  %1414 = vmatpush3.bf16.msk.msra.mxu0 %vm2231_vm3, %v2064_v48  ;;  %vm95_vm5 = vcmp.eq.s32.totalorder %v1967_v36, %v1985_v37  ;;  %vm132_vm6 = vcmp.eq.s32.totalorder %v1964_v35, %v1995_v39  ;;  %v665_v35 = vld [vmem:[#allocation8 + $0x48] sm:$0xff]  ;;  %v666_v37 = vld [vmem:[#allocation8 + $0x50] sm:$0xff] }
  0x6b   :  { %1510 = vmatpush3.bf16.msk.msra.mxu1 %vm2649_vm13, %v2077_v50  ;;  %1417 = vmatprep.subr.msk.bf16.mxu0 %vm2400_vm12, %v2064_v48  ;;  %vm2428_vm9 = vmpackc.low %vm93_vm2, %vm92_vm1  ;;  %vm133_vm13 = vcmp.eq.s32.totalorder %v1967_v36, %v1995_v39  ;;  %vm591_vm2 = vcmp.eq.s32.totalorder %v1776_v3, %v2099_v53  ;;  %v153_v3 = vld [vmem:[#allocation8 + $0x8] sm:$0xff]  ;;  %v667_v39 = vld [vmem:[#allocation8 + $0x58] sm:$0xff] }
  0x6c   :  { %1513 = vmatprep.subr.msk.bf16.mxu1 %vm2404_vm4, %v2077_v50  ;;  %vm2432_vm3 = vmpackc.low %vm131_vm0, %vm130_vm8  ;;  %vm592_vm8 = vcmp.eq.s32.totalorder %v1789_v6, %v2099_v53  ;;  %v158_v6 = vld [vmem:[#allocation8 + $0x68] sm:$0xff]  ;;  %vm2658_vm0 = vnez %v2601_v61 }
  0x6d   :  { %vm1428_vm1 = vmpackc.low %vm95_vm5, %vm94_vm7  ;;  %vm2661_vm7 = vnez %v2615_v5  ;;  %vm2662_vm5 = vnez %v2623_v9  ;;  %v759_v36 = vld [vmem:[#allocation8 + $0xa8] sm:$0xff] }
  0x6e   :  { %1420 = vmatpush3.bf16.msk.msra.mxu0 %vm2400_vm12, %v2064_v48  ;;  %vm1524_vm12 = vmpackc.low %vm133_vm13, %vm132_vm6  ;;  %vm2663_vm6 = vnez %v2627_v10  ;;  %vm2664_vm13 = vnez %v2631_v12 }
  0x6f   :  { %1516 = vmatpush3.bf16.msk.msra.mxu1 %vm2404_vm4, %v2077_v50  ;;  %1423 = vmatprep.subr.msk.bf16.mxu0 %vm2428_vm9, %v2064_v48  ;;  %vm1530_vm4 = vmpackc.low %vm592_vm8, %vm591_vm2  ;;  %vm2667_vm2 = vnez %v2640_v16  ;;  %vm2668_vm8 = vnez %v2642_v17 }
  0x70   :  { %1519 = vmatprep.subr.msk.bf16.mxu1 %vm2432_vm3, %v2077_v50 }
  0x72   :  { %1426 = vmatpush3.bf16.msk.msra.mxu0 %vm2428_vm9, %v2064_v48  ;;  %vm2659_vm9 = vnez %v2605_v0 }
  0x73   :  { %1522 = vmatpush3.bf16.msk.msra.mxu1 %vm2432_vm3, %v2077_v50  ;;  %1429 = vmatprep.subr.msk.bf16.mxu0 %vm1428_vm1, %v2064_v48  ;;  %vm2660_vm3 = vnez %v2608_v2 }
  0x74   :  { %1525 = vmatprep.subr.msk.bf16.mxu1 %vm1524_vm12, %v2077_v50 }
  0x76   :  { %1432 = vmatpush3.bf16.msk.msra.mxu0 %vm1428_vm1, %v2064_v48  ;;  %vm2665_vm1 = vnez %v2636_v14 }
  0x77   :  { %1528 = vmatpush3.bf16.msk.msra.mxu1 %vm1524_vm12, %v2077_v50  ;;  %1531 = vmatprep.subr.msk.bf16.mxu0 %vm1530_vm4, %v1529_v27  ;;  %vm2666_vm12 = vnez %v2638_v15 }
  0x78   :  { %1579 = vmatprep.subr.msk.bf16.mxu1 %vm2658_vm0, %v1577_v28 }
  0x79   :  { %1180 = vmatmul.mubr.f32.vlgmr.msra.gmra.mrb[0].mxu0 %v153_v3 }
  0x7a   :  { %1256 = vmatmul.mubr.f32.vlgmr.msra.gmra.mrb[0].mxu1 %v158_v6  ;;  %1534 = vmatpush3.bf16.msk.msra.mxu0 %vm1530_vm4, %v1529_v27 }
  0x7b   :  { %1582 = vmatpush3.bf16.msk.msra.mxu1 %vm2658_vm0, %v1577_v28  ;;  %1537 = vmatprep.subr.msk.bf16.mxu0 %vm2659_vm9, %v1529_v27 }
  0x7c   :  { %1585 = vmatprep.subr.msk.bf16.mxu1 %vm2660_vm3, %v1577_v28  ;;  %1182 = vmatprep.mubr.f32.mxu0 %v154_v29 }
  0x7d   :  { %1258 = vmatprep.mubr.f32.mxu1 %v159_v30  ;;  %1183 = vmatmul.mubr.f32.gmra.mrb[2].mxu0 %v155_v31 }
  0x7e   :  { %1540 = vmatpush3.bf16.msk.msra.mxu0 %vm2659_vm9, %v1529_v27  ;;  %1259 = vmatmul.mubr.f32.gmra.mrb[2].mxu1 %v160_v32 }
  0x7f   :  { %1588 = vmatpush3.bf16.msk.msra.mxu1 %vm2660_vm3, %v1577_v28  ;;  %1543 = vmatprep.subr.msk.bf16.mxu0 %vm2661_vm7, %v1529_v27 }
  0x80   :  { %1591 = vmatprep.subr.msk.bf16.mxu1 %vm2662_vm5, %v1577_v28  ;;  %1293 = vmatprep.mubr.f32.mxu0 %v664_v33 }
  0x81   :  { %1331 = vmatprep.mubr.f32.mxu1 %v758_v34 }
  0x82   :  { %1546 = vmatpush3.bf16.msk.msra.mxu0 %vm2661_vm7, %v1529_v27 }
  0x83   :  { %1594 = vmatpush3.bf16.msk.msra.mxu1 %vm2662_vm5, %v1577_v28  ;;  %1549 = vmatprep.subr.msk.bf16.mxu0 %vm2663_vm6, %v1529_v27 }
  0x84   :  { %1597 = vmatprep.subr.msk.bf16.mxu1 %vm2664_vm13, %v1577_v28 }
  0x86   :  { %1552 = vmatpush3.bf16.msk.msra.mxu0 %vm2663_vm6, %v1529_v27 }
  0x87   :  { %1600 = vmatpush3.bf16.msk.msra.mxu1 %vm2664_vm13, %v1577_v28  ;;  %1555 = vmatprep.subr.msk.bf16.mxu0 %vm2316_vm11, %v1529_v27 }
  0x88   :  { %1603 = vmatprep.subr.msk.bf16.mxu1 %vm2665_vm1, %v1577_v28 }
  0x8a   :  { %1558 = vmatpush3.bf16.msk.msra.mxu0 %vm2316_vm11, %v1529_v27 }
  0x8b   :  { %1606 = vmatpush3.bf16.msk.msra.mxu1 %vm2665_vm1, %v1577_v28  ;;  %1561 = vmatprep.subr.msk.bf16.mxu0 %vm2666_vm12, %v1529_v27 }
  0x8c   :  { %1609 = vmatprep.subr.msk.bf16.mxu1 %vm2667_vm2, %v1577_v28 }
  0x8e   :  { %1564 = vmatpush3.bf16.msk.msra.mxu0 %vm2666_vm12, %v1529_v27 }
  0x8f   :  { %1612 = vmatpush3.bf16.msk.msra.mxu1 %vm2667_vm2, %v1577_v28  ;;  %1567 = vmatprep.subr.msk.bf16.mxu0 %vm2668_vm8, %v1529_v27 }
  0x90   :  { %1615 = vmatprep.subr.msk.bf16.mxu1 %vm2372_vm10, %v1577_v28 }
  0x92   :  { %1570 = vmatpush3.bf16.msk.msra.mxu0 %vm2668_vm8, %v1529_v27 }
  0x93   :  { %1618 = vmatpush3.bf16.msk.msra.mxu1 %vm2372_vm10, %v1577_v28  ;;  %1573 = vmatprep.subr.msk.bf16.mxu0 %vm2383_vm15, %v1529_v27 }
  0x94   :  { %1621 = vmatprep.subr.msk.bf16.mxu1 %vm2393_vm14, %v1577_v28 }
  0x96   :  { %1576 = vmatpush3.bf16.msk.msra.mxu0 %vm2383_vm15, %v1529_v27 }
  0x97   :  { %1624 = vmatpush3.bf16.msk.msra.mxu1 %vm2393_vm14, %v1577_v28 }
  0x99   :  { %1294 = vmatmul.mubr.f32.vlgmr.msra.gmra.mrb[0].mxu0 %v665_v35 }
  0x9a   :  { %1332 = vmatmul.mubr.f32.vlgmr.msra.gmra.mrb[0].mxu1 %v759_v36  ;;  %1296 = vmatprep.mubr.f32.mxu0 %v666_v37 }
  0x9b   :  { %1334 = vmatprep.mubr.f32.mxu1 %v760_v38 }
  0x9d   :  { %1297 = vmatmul.mubr.f32.gmra.mrb[2].mxu0 %v667_v39 }
  0x9e   :  { %1335 = vmatmul.mubr.f32.gmra.mrb[2].mxu1 %v761_v40 }
 0x16c   :  { %v1295_v41 = vpop.f32.mrb[0].mxu0 }
 0x16d   :  { %v1333_v42 = vpop.f32.mrb[0].mxu1  ;;  %v734_v43 = vpop.f32.mrb[1].mxu0 }
 0x16e   :  { %v852_v44 = vmul.f32 %v1333_v42, %v1295_v41  ;;  %v828_v45 = vpop.f32.mrb[1].mxu1 }
 0x16f   :  { %v851_v46 = vmul.f32 %v828_v45, %v734_v43 }
 0x170   :  { %v1298_v47 = vpop.f32.mrb[2].mxu0 }
 0x171   :  { %v855_v48 = vadd.f32 %v852_v44, %v851_v46  ;;  %v1336_v49 = vpop.f32.mrb[2].mxu1  ;;  %v744_v50 = vpop.f32.mrb[3].mxu0 }
 0x172   :  { %v854_v51 = vmul.f32 %v1336_v49, %v1298_v47  ;;  %v838_v52 = vpop.f32.mrb[3].mxu1 }
 0x173   :  { %v853_v53 = vmul.f32 %v838_v52, %v744_v50 }
 0x175   :  { %v856_v54 = vadd.f32 %v855_v48, %v853_v53 }
 0x177   :  { %v857_v55 = vadd.f32 %v856_v54, %v854_v51 }
 0x179   :  { %v858_v56 = vrot.slane %v857_v55, 4 }
 0x17b   :  { %v859_v57 = vadd.f32 %v858_v56, %v857_v55 }
 0x17d   :  { %v860_v58 = vrot.slane %v859_v57, 2 }
 0x17f   :  { %v861_v59 = vadd.f32 %v860_v58, %v859_v57 }
 0x181   :  { %v862_v60 = vrot.slane %v861_v59, 1 }
 0x183   :  { %v863_v61 = vadd.f32 %v862_v60, %v861_v59 }
 0x185   :  { %v988_v62 = vmul.f32 -1.442695, %v863_v61 }
 0x187   :  { %1647 = vpow2.f32 %v988_v62 }
 0x191   :  { %v1648_v63 = vpop.eup %1647 }
 0x192   :  { %v867_v0 = vadd.f32 1.0, %v1648_v63 }
 0x194   :  { %1649 = vrcp.f32 %v867_v0 }
 0x19e   :  { %v1650_v1 = vpop.eup %1649 }
 0x19f   :  { %870 = vst [vmem:[#allocation9] sm:$0x1] %v1650_v1 }
 0x1a0   :  { %1708 = shalt.err (!%p1705_p8)
}
 0x1a1   :  { %s1709_s1 = scalar_lea.hbm %s2546_s4, 16 }
 0x1a2   :  { %p1710_p9 = scmp.ne.s32.totalorder %s2546_s4, %s1709_s1  ;;  %p1713_p10 = scmp.lt.u32.totalorder %s1709_s1, %s2546_s4 }
 0x1a4   :  { %p1715_p11 = pnand %p1713_p10, %p1710_p9 }
 0x1a6   :  { %1718 = shalt.err (!%p1715_p11)
}
 0x1a7   :  { %880 = dma.vmem_to_hbm [thread:$0]  %s878_s20, 16, %s2546_s4, [#allocation4]  }
 0x1a8   :  { %1725 = dma.done.wait [#allocation4], 16  }
 0x1a9   :  { %1726 = vsyncadd [#allocation4], 4294967280 }
 0x1aa   :  { %884 = vsyncpa [#allocation3], 1 }
 0x1ab   :  { %885 = vsyncpa [#allocation4], 1 }
 0x1ac   :  { %886 = vsyncpa [#allocation5], 1 }
 0x1ad   :  { %887 = vsyncpa [#allocation7], 1 }

</bundles_post_ra>
